<compile_context>
chip_gen: v7x
topology: tpu7x:2x2x1
jax: 0.10.0
libtpu: 0.0.40
codegen_flags: <defaults>
</compile_context>

<pallas_src>
import functools
import math

import jax
import jax.numpy as jnp
from jax import lax
from jax.experimental import pallas as pl
from jax.experimental.pallas import tpu as pltpu


def _mha_kernel(x_ref, wqkv_ref, bqkv_ref, wo_ref, bo_ref, o_ref, acc_ref, *,
                heads_per_block, head_dim):
    hb = pl.program_id(1)
    n_hb = pl.num_programs(1)
    hd = head_dim
    qkv_w = heads_per_block * hd
    scale = 1.0 / math.sqrt(hd)

    @pl.when(hb == 0)
    def _():
        acc_ref[...] = jnp.zeros_like(acc_ref)

    x = x_ref[0]                                                   # (S, E)

    # Packed Q/K/V projection for every head in this block: one wide matmul.
    proj = jnp.dot(x, wqkv_ref[0], preferred_element_type=jnp.float32)
    proj = proj + bqkv_ref[0]                                      # (S, 3*HB*hd)

    q_all = proj[:, 0 * qkv_w:1 * qkv_w]                           # (S, HB*hd)
    k_all = proj[:, 1 * qkv_w:2 * qkv_w]
    v_all = proj[:, 2 * qkv_w:3 * qkv_w]

    # Per-head scaled-dot-product attention with deferred softmax norm.
    ctx_list = []
    for h in range(heads_per_block):
        q = q_all[:, h * hd:(h + 1) * hd]
        k = k_all[:, h * hd:(h + 1) * hd]
        v = v_all[:, h * hd:(h + 1) * hd]

        # Contract the hd axis of both operands (no explicit k.T transpose).
        scores = lax.dot_general(
            q, k, (((1,), (1,)), ((), ())),
            preferred_element_type=jnp.float32) * scale            # (S, S)

        m = jnp.max(scores, axis=-1, keepdims=True)
        p = jnp.exp(scores - m)
        l = jnp.sum(p, axis=-1, keepdims=True)                     # (S, 1)

        ctx = jnp.dot(p, v, preferred_element_type=jnp.float32)    # (S, hd)
        # Deferred normalization: scale the small (S, hd) context, not (S, S).
        ctx = ctx * pl.reciprocal(l, approx=False)
        ctx_list.append(ctx)

    # Fused output projection for the whole head block: one wide-K matmul,
    # accumulated in f32 scratch across head blocks.
    ctx_all = jnp.concatenate(ctx_list, axis=-1)                   # (S, HB*hd)
    acc_ref[...] += jnp.dot(ctx_all, wo_ref[0],
                            preferred_element_type=jnp.float32)    # (S, E)

    @pl.when(hb == n_hb - 1)
    def _():
        o_ref[0] = (acc_ref[...] + bo_ref[...]).astype(o_ref.dtype)


def multi_head_attention(x, wq, bq, wk, bk, wv, bv, wo, bo, *,
                         heads_per_block=None):
    B, S, E = x.shape
    H, _, hd = wq.shape

    if heads_per_block is None:
        heads_per_block = H          # small models: all heads per grid step
    HB = heads_per_block
    assert H % HB == 0
    n_hb = H // HB
    CB = 3 * HB * hd

    # ---- pack weights (wrapper-side, plain JAX) --------------------------
    def _blk(w):  # (H, E, hd) -> (n_hb, E, HB*hd), head-major columns
        return (w.reshape(n_hb, HB, E, hd)
                 .transpose(0, 2, 1, 3)
                 .reshape(n_hb, E, HB * hd))

    wqkv = jnp.concatenate([_blk(wq), _blk(wk), _blk(wv)], axis=-1)  # (n_hb,E,CB)
    bqkv = jnp.concatenate([bq.reshape(n_hb, HB * hd),
                            bk.reshape(n_hb, HB * hd),
                            bv.reshape(n_hb, HB * hd)], axis=-1)
    bqkv = bqkv.reshape(n_hb, 1, CB)                                 # lane-dense
    wo_blk = wo.reshape(n_hb, HB * hd, E)                            # head-major rows
    bo2 = bo.reshape(1, E)

    # ---- resource hints --------------------------------------------------
    itemsize = 4
    block_bytes = itemsize * (S * E            # x tile
                              + E * CB         # wqkv block
                              + CB             # bqkv block
                              + HB * hd * E    # wo block
                              + E              # bo
                              + S * E)         # out tile
    scratch_bytes = itemsize * S * E
    vmem_limit = int(2.5 * block_bytes) + scratch_bytes + (2 << 20)
    vmem_limit = min(max(vmem_limit, 32 << 20), 64 << 20)

    flops = (2 * B * S * E * 3 * E            # qkv projection
             + 4 * B * H * S * S * hd         # scores + p@v
             + 2 * B * S * H * hd * E)        # output projection
    cost = pl.CostEstimate(
        flops=flops,
        transcendentals=B * H * S * S,
        bytes_accessed=itemsize * (2 * B * S * E + H * E * 4 * hd + E + 3 * H * hd))

    kernel = functools.partial(_mha_kernel, heads_per_block=HB, head_dim=hd)

    return pl.pallas_call(
        kernel,
        out_shape=jax.ShapeDtypeStruct((B, S, E), x.dtype),
        grid_spec=pltpu.PrefetchScalarGridSpec(
            num_scalar_prefetch=0,
            grid=(B, n_hb),
            in_specs=[
                pl.BlockSpec((1, S, E), lambda b, hb: (b, 0, 0)),          # x
                pl.BlockSpec((1, E, CB), lambda b, hb: (hb, 0, 0)),        # Wqkv
                pl.BlockSpec((1, 1, CB), lambda b, hb: (hb, 0, 0)),        # bqkv
                pl.BlockSpec((1, HB * hd, E), lambda b, hb: (hb, 0, 0)),   # Wo blk
                pl.BlockSpec((1, E), lambda b, hb: (0, 0)),                # bo
            ],
            out_specs=pl.BlockSpec((1, S, E), lambda b, hb: (b, 0, 0)),
            scratch_shapes=[pltpu.VMEM((S, E), jnp.float32)],              # f32 acc
        ),
        compiler_params=pltpu.CompilerParams(
            dimension_semantics=("parallel", "arbitrary"),
            vmem_limit_bytes=vmem_limit),
        cost_estimate=cost,
    )(x, wqkv, bqkv, wo_blk, bo2)


def reference(x, wq, bq, wk, bk, wv, bv, wo, bo):
    # Pure-JAX reference mirroring the PyTorch module.
    H = wq.shape[0]
    hd = wq.shape[-1]
    head_outs = []
    for h in range(H):
        q = x @ wq[h] + bq[h]
        k = x @ wk[h] + bk[h]
        v = x @ wv[h] + bv[h]
        scores = jnp.einsum("bqd,bkd->bqk", q, k) / math.sqrt(hd)
        w = jax.nn.softmax(scores, axis=-1)
        head_outs.append(jnp.einsum("bqk,bkd->bqd", w, v))
    cat = jnp.concatenate(head_outs, axis=-1)
    wo_full = jnp.concatenate([wo[h] for h in range(H)], axis=0)  # (E, E)
    return cat @ wo_full + bo[0]


if __name__ == "__main__":
    B, S, E, H = 2, 8, 32, 4
    hd = E // H

    key = jax.random.PRNGKey(0)
    keys = jax.random.split(key, 10)
    scale = 0.05
    x = jax.random.normal(keys[0], (B, S, E), dtype=jnp.float32)
    wq = scale * jax.random.normal(keys[1], (H, E, hd), dtype=jnp.float32)
    bq = scale * jax.random.normal(keys[2], (H, hd), dtype=jnp.float32)
    wk = scale * jax.random.normal(keys[3], (H, E, hd), dtype=jnp.float32)
    bk = scale * jax.random.normal(keys[4], (H, hd), dtype=jnp.float32)
    wv = scale * jax.random.normal(keys[5], (H, E, hd), dtype=jnp.float32)
    bv = scale * jax.random.normal(keys[6], (H, hd), dtype=jnp.float32)
    wo = scale * jax.random.normal(keys[7], (H, hd, E), dtype=jnp.float32)
    bo = scale * jax.random.normal(keys[8], (1, E), dtype=jnp.float32)

    out = multi_head_attention(x, wq, bq, wk, bk, wv, bv, wo, bo)
    out = jax.block_until_ready(out)

    ref = reference(x, wq, bq, wk, bk, wv, bv, wo, bo)
    assert out.shape == (B, S, E)
    assert jnp.allclose(out, ref, atol=1e-5, rtol=1e-5), "mismatch vs reference"

    print("KERNEL_OK")
</pallas_src>

<mosaic_0001>
module attributes {stable_mosaic.version = 11 : i64} {
  func.func @_mha_kernel(%arg0: i32, %arg1: i32, %arg2: memref<1x8x32xf32, #tpu.memory_space<vmem>>, %arg3: memref<1x32x96xf32, #tpu.memory_space<vmem>>, %arg4: memref<1x1x96xf32, #tpu.memory_space<vmem>>, %arg5: memref<1x32x32xf32, #tpu.memory_space<vmem>>, %arg6: memref<1x32xf32, #tpu.memory_space<vmem>>, %arg7: memref<1x8x32xf32, #tpu.memory_space<vmem>>, %arg8: memref<8x32xf32, #tpu.memory_space<vmem>>) attributes {dimension_semantics = [#tpu.dimension_semantics<parallel>, #tpu.dimension_semantics<arbitrary>], iteration_bounds = array<i64: 2, 1>, scalar_prefetch = 0 : i64, scratch_operands = 1 : i64, tpu.core_type = #tpu.core_type<tc>, window_params = [{transform_indices = @transform_0, window_bounds = array<i64: 1, 8, 32>}, {transform_indices = @transform_1, window_bounds = array<i64: 1, 32, 96>}, {transform_indices = @transform_2, window_bounds = array<i64: 1, 1, 96>}, {transform_indices = @transform_3, window_bounds = array<i64: 1, 32, 32>}, {pipeline_mode = #tpu.pipeline_mode<synchronous>, transform_indices = @transform_4, window_bounds = array<i64: 1, 32>}, {transform_indices = @transform_5, window_bounds = array<i64: 1, 8, 32>}]} {
    %c0_i32 = arith.constant 0 : i32
    %0 = arith.cmpi eq, %arg1, %c0_i32 : i32
    %1 = arith.extui %0 : i1 to i32
    %c0_i32_0 = arith.constant 0 : i32
    %2 = arith.cmpi ne, %1, %c0_i32_0 : i32
    scf.if %2 {
      %cst_39 = arith.constant 0.000000e+00 : f32
      %93 = vector.broadcast %cst_39 : f32 to vector<8x32xf32>
      %c0_40 = arith.constant 0 : index
      %c0_41 = arith.constant 0 : index
      %94 = vector.load %arg8[%c0_40, %c0_41] : memref<8x32xf32, #tpu.memory_space<vmem>>, vector<8x32xf32>
      tpu.vector_store %arg8[%c0_40, %c0_41], %93 {strides = array<i32>} : memref<8x32xf32, #tpu.memory_space<vmem>>, vector<8x32xf32>,
    } else {
    }
    %c0 = arith.constant 0 : index
    %c0_1 = arith.constant 0 : index
    %c0_2 = arith.constant 0 : index
    %3 = vector.load %arg2[%c0, %c0_1, %c0_2] : memref<1x8x32xf32, #tpu.memory_space<vmem>>, vector<1x8x32xf32>
    %4 = vector.shape_cast %3 : vector<1x8x32xf32> to vector<8x32xf32>
    %c0_3 = arith.constant 0 : index
    %c0_4 = arith.constant 0 : index
    %c0_5 = arith.constant 0 : index
    %5 = vector.load %arg3[%c0_3, %c0_4, %c0_5] : memref<1x32x96xf32, #tpu.memory_space<vmem>>, vector<1x32x96xf32>
    %6 = vector.shape_cast %5 : vector<1x32x96xf32> to vector<32x96xf32>
    %cst = arith.constant dense<0.000000e+00> : vector<8x96xf32>
    %7 = tpu.matmul %4, %6, %cst {dimension_numbers = #tpu.dot_dimension_numbers<[1], [0], [0], [1], [0, 0, 1, 1], [], []>} : vector<8x32xf32>, vector<32x96xf32>, vector<8x96xf32> -> vector<8x96xf32>
    %c0_6 = arith.constant 0 : index
    %c0_7 = arith.constant 0 : index
    %c0_8 = arith.constant 0 : index
    %8 = vector.load %arg4[%c0_6, %c0_7, %c0_8] : memref<1x1x96xf32, #tpu.memory_space<vmem>>, vector<1x1x96xf32>
    %9 = vector.shape_cast %8 : vector<1x1x96xf32> to vector<1x96xf32>
    %10 = vector.broadcast %9 : vector<1x96xf32> to vector<8x96xf32>
    %11 = arith.addf %7, %10 : vector<8x96xf32>
    %12 = vector.extract_strided_slice %11 {offsets = [0, 0], sizes = [8, 32], strides = [1, 1]} : vector<8x96xf32> to vector<8x32xf32>
    %13 = vector.extract_strided_slice %11 {offsets = [0, 32], sizes = [8, 32], strides = [1, 1]} : vector<8x96xf32> to vector<8x32xf32>
    %14 = vector.extract_strided_slice %11 {offsets = [0, 64], sizes = [8, 32], strides = [1, 1]} : vector<8x96xf32> to vector<8x32xf32>
    %15 = vector.extract_strided_slice %12 {offsets = [0, 0], sizes = [8, 8], strides = [1, 1]} : vector<8x32xf32> to vector<8x8xf32>
    %16 = vector.extract_strided_slice %13 {offsets = [0, 0], sizes = [8, 8], strides = [1, 1]} : vector<8x32xf32> to vector<8x8xf32>
    %17 = vector.extract_strided_slice %14 {offsets = [0, 0], sizes = [8, 8], strides = [1, 1]} : vector<8x32xf32> to vector<8x8xf32>
    %cst_9 = arith.constant dense<0.000000e+00> : vector<8x8xf32>
    %18 = tpu.matmul %15, %16, %cst_9 {dimension_numbers = #tpu.dot_dimension_numbers<[1], [1], [0], [0], [0, 0, 1, 0], [], []>} : vector<8x8xf32>, vector<8x8xf32>, vector<8x8xf32> -> vector<8x8xf32>
    %cst_10 = arith.constant 0.353553385 : f32
    %19 = vector.broadcast %cst_10 : f32 to vector<8x8xf32>
    %20 = arith.mulf %18, %19 : vector<8x8xf32>
    %cst_11 = arith.constant dense<0xFF800000> : vector<8xf32>
    %21 = vector.multi_reduction <maximumf>, %20, %cst_11 [1] : vector<8x8xf32> to vector<8xf32>
    %22 = vector.shape_cast %21 : vector<8xf32> to vector<8x1xf32>
    %23 = vector.broadcast %22 : vector<8x1xf32> to vector<8x8xf32>
    %24 = arith.subf %20, %23 : vector<8x8xf32>
    %25 = math.exp %24 : vector<8x8xf32>
    %cst_12 = arith.constant dense<0.000000e+00> : vector<8xf32>
    %26 = vector.multi_reduction <add>, %25, %cst_12 [1] : vector<8x8xf32> to vector<8xf32>
    %27 = vector.shape_cast %26 : vector<8xf32> to vector<8x1xf32>
    %cst_13 = arith.constant dense<0.000000e+00> : vector<8x8xf32>
    %28 = tpu.matmul %25, %17, %cst_13 {dimension_numbers = #tpu.dot_dimension_numbers<[1], [0], [0], [1], [0, 0, 1, 1], [], []>} : vector<8x8xf32>, vector<8x8xf32>, vector<8x8xf32> -> vector<8x8xf32>
    %29 = tpu.reciprocal %27 : vector<8x1xf32> -> vector<8x1xf32>
    %30 = vector.broadcast %29 : vector<8x1xf32> to vector<8x8xf32>
    %31 = arith.mulf %28, %30 : vector<8x8xf32>
    %32 = vector.extract_strided_slice %12 {offsets = [0, 8], sizes = [8, 8], strides = [1, 1]} : vector<8x32xf32> to vector<8x8xf32>
    %33 = vector.extract_strided_slice %13 {offsets = [0, 8], sizes = [8, 8], strides = [1, 1]} : vector<8x32xf32> to vector<8x8xf32>
    %34 = vector.extract_strided_slice %14 {offsets = [0, 8], sizes = [8, 8], strides = [1, 1]} : vector<8x32xf32> to vector<8x8xf32>
    %cst_14 = arith.constant dense<0.000000e+00> : vector<8x8xf32>
    %35 = tpu.matmul %32, %33, %cst_14 {dimension_numbers = #tpu.dot_dimension_numbers<[1], [1], [0], [0], [0, 0, 1, 0], [], []>} : vector<8x8xf32>, vector<8x8xf32>, vector<8x8xf32> -> vector<8x8xf32>
    %cst_15 = arith.constant 0.353553385 : f32
    %36 = vector.broadcast %cst_15 : f32 to vector<8x8xf32>
    %37 = arith.mulf %35, %36 : vector<8x8xf32>
    %cst_16 = arith.constant dense<0xFF800000> : vector<8xf32>
    %38 = vector.multi_reduction <maximumf>, %37, %cst_16 [1] : vector<8x8xf32> to vector<8xf32>
    %39 = vector.shape_cast %38 : vector<8xf32> to vector<8x1xf32>
    %40 = vector.broadcast %39 : vector<8x1xf32> to vector<8x8xf32>
    %41 = arith.subf %37, %40 : vector<8x8xf32>
    %42 = math.exp %41 : vector<8x8xf32>
    %cst_17 = arith.constant dense<0.000000e+00> : vector<8xf32>
    %43 = vector.multi_reduction <add>, %42, %cst_17 [1] : vector<8x8xf32> to vector<8xf32>
    %44 = vector.shape_cast %43 : vector<8xf32> to vector<8x1xf32>
    %cst_18 = arith.constant dense<0.000000e+00> : vector<8x8xf32>
    %45 = tpu.matmul %42, %34, %cst_18 {dimension_numbers = #tpu.dot_dimension_numbers<[1], [0], [0], [1], [0, 0, 1, 1], [], []>} : vector<8x8xf32>, vector<8x8xf32>, vector<8x8xf32> -> vector<8x8xf32>
    %46 = tpu.reciprocal %44 : vector<8x1xf32> -> vector<8x1xf32>
    %47 = vector.broadcast %46 : vector<8x1xf32> to vector<8x8xf32>
    %48 = arith.mulf %45, %47 : vector<8x8xf32>
    %49 = vector.extract_strided_slice %12 {offsets = [0, 16], sizes = [8, 8], strides = [1, 1]} : vector<8x32xf32> to vector<8x8xf32>
    %50 = vector.extract_strided_slice %13 {offsets = [0, 16], sizes = [8, 8], strides = [1, 1]} : vector<8x32xf32> to vector<8x8xf32>
    %51 = vector.extract_strided_slice %14 {offsets = [0, 16], sizes = [8, 8], strides = [1, 1]} : vector<8x32xf32> to vector<8x8xf32>
    %cst_19 = arith.constant dense<0.000000e+00> : vector<8x8xf32>
    %52 = tpu.matmul %49, %50, %cst_19 {dimension_numbers = #tpu.dot_dimension_numbers<[1], [1], [0], [0], [0, 0, 1, 0], [], []>} : vector<8x8xf32>, vector<8x8xf32>, vector<8x8xf32> -> vector<8x8xf32>
    %cst_20 = arith.constant 0.353553385 : f32
    %53 = vector.broadcast %cst_20 : f32 to vector<8x8xf32>
    %54 = arith.mulf %52, %53 : vector<8x8xf32>
    %cst_21 = arith.constant dense<0xFF800000> : vector<8xf32>
    %55 = vector.multi_reduction <maximumf>, %54, %cst_21 [1] : vector<8x8xf32> to vector<8xf32>
    %56 = vector.shape_cast %55 : vector<8xf32> to vector<8x1xf32>
    %57 = vector.broadcast %56 : vector<8x1xf32> to vector<8x8xf32>
    %58 = arith.subf %54, %57 : vector<8x8xf32>
    %59 = math.exp %58 : vector<8x8xf32>
    %cst_22 = arith.constant dense<0.000000e+00> : vector<8xf32>
    %60 = vector.multi_reduction <add>, %59, %cst_22 [1] : vector<8x8xf32> to vector<8xf32>
    %61 = vector.shape_cast %60 : vector<8xf32> to vector<8x1xf32>
    %cst_23 = arith.constant dense<0.000000e+00> : vector<8x8xf32>
    %62 = tpu.matmul %59, %51, %cst_23 {dimension_numbers = #tpu.dot_dimension_numbers<[1], [0], [0], [1], [0, 0, 1, 1], [], []>} : vector<8x8xf32>, vector<8x8xf32>, vector<8x8xf32> -> vector<8x8xf32>
    %63 = tpu.reciprocal %61 : vector<8x1xf32> -> vector<8x1xf32>
    %64 = vector.broadcast %63 : vector<8x1xf32> to vector<8x8xf32>
    %65 = arith.mulf %62, %64 : vector<8x8xf32>
    %66 = vector.extract_strided_slice %12 {offsets = [0, 24], sizes = [8, 8], strides = [1, 1]} : vector<8x32xf32> to vector<8x8xf32>
    %67 = vector.extract_strided_slice %13 {offsets = [0, 24], sizes = [8, 8], strides = [1, 1]} : vector<8x32xf32> to vector<8x8xf32>
    %68 = vector.extract_strided_slice %14 {offsets = [0, 24], sizes = [8, 8], strides = [1, 1]} : vector<8x32xf32> to vector<8x8xf32>
    %cst_24 = arith.constant dense<0.000000e+00> : vector<8x8xf32>
    %69 = tpu.matmul %66, %67, %cst_24 {dimension_numbers = #tpu.dot_dimension_numbers<[1], [1], [0], [0], [0, 0, 1, 0], [], []>} : vector<8x8xf32>, vector<8x8xf32>, vector<8x8xf32> -> vector<8x8xf32>
    %cst_25 = arith.constant 0.353553385 : f32
    %70 = vector.broadcast %cst_25 : f32 to vector<8x8xf32>
    %71 = arith.mulf %69, %70 : vector<8x8xf32>
    %cst_26 = arith.constant dense<0xFF800000> : vector<8xf32>
    %72 = vector.multi_reduction <maximumf>, %71, %cst_26 [1] : vector<8x8xf32> to vector<8xf32>
    %73 = vector.shape_cast %72 : vector<8xf32> to vector<8x1xf32>
    %74 = vector.broadcast %73 : vector<8x1xf32> to vector<8x8xf32>
    %75 = arith.subf %71, %74 : vector<8x8xf32>
    %76 = math.exp %75 : vector<8x8xf32>
    %cst_27 = arith.constant dense<0.000000e+00> : vector<8xf32>
    %77 = vector.multi_reduction <add>, %76, %cst_27 [1] : vector<8x8xf32> to vector<8xf32>
    %78 = vector.shape_cast %77 : vector<8xf32> to vector<8x1xf32>
    %cst_28 = arith.constant dense<0.000000e+00> : vector<8x8xf32>
    %79 = tpu.matmul %76, %68, %cst_28 {dimension_numbers = #tpu.dot_dimension_numbers<[1], [0], [0], [1], [0, 0, 1, 1], [], []>} : vector<8x8xf32>, vector<8x8xf32>, vector<8x8xf32> -> vector<8x8xf32>
    %80 = tpu.reciprocal %78 : vector<8x1xf32> -> vector<8x1xf32>
    %81 = vector.broadcast %80 : vector<8x1xf32> to vector<8x8xf32>
    %82 = arith.mulf %79, %81 : vector<8x8xf32>
    %83 = tpu.concatenate %31, %48, %65, %82 in 1 : vector<8x8xf32>, vector<8x8xf32>, vector<8x8xf32>, vector<8x8xf32> -> vector<8x32xf32>
    %c0_29 = arith.constant 0 : index
    %c0_30 = arith.constant 0 : index
    %84 = vector.load %arg8[%c0_29, %c0_30] : memref<8x32xf32, #tpu.memory_space<vmem>>, vector<8x32xf32>
    %c0_31 = arith.constant 0 : index
    %c0_32 = arith.constant 0 : index
    %c0_33 = arith.constant 0 : index
    %85 = vector.load %arg5[%c0_31, %c0_32, %c0_33] : memref<1x32x32xf32, #tpu.memory_space<vmem>>, vector<1x32x32xf32>
    %86 = vector.shape_cast %85 : vector<1x32x32xf32> to vector<32x32xf32>
    %cst_34 = arith.constant dense<0.000000e+00> : vector<8x32xf32>
    %87 = tpu.matmul %83, %86, %cst_34 {dimension_numbers = #tpu.dot_dimension_numbers<[1], [0], [0], [1], [0, 0, 1, 1], [], []>} : vector<8x32xf32>, vector<32x32xf32>, vector<8x32xf32> -> vector<8x32xf32>
    %88 = arith.addf %84, %87 : vector<8x32xf32>
    %c0_35 = arith.constant 0 : index
    %c0_36 = arith.constant 0 : index
    %89 = vector.load %arg8[%c0_35, %c0_36] : memref<8x32xf32, #tpu.memory_space<vmem>>, vector<8x32xf32>
    tpu.vector_store %arg8[%c0_35, %c0_36], %88 {strides = array<i32>} : memref<8x32xf32, #tpu.memory_space<vmem>>, vector<8x32xf32>,
    %c0_i32_37 = arith.constant 0 : i32
    %90 = arith.cmpi eq, %arg1, %c0_i32_37 : i32
    %91 = arith.extui %90 : i1 to i32
    %c0_i32_38 = arith.constant 0 : i32
    %92 = arith.cmpi ne, %91, %c0_i32_38 : i32
    scf.if %92 {
      %c0_39 = arith.constant 0 : index
      %c0_40 = arith.constant 0 : index
      %93 = vector.load %arg8[%c0_39, %c0_40] : memref<8x32xf32, #tpu.memory_space<vmem>>, vector<8x32xf32>
      %c0_41 = arith.constant 0 : index
      %c0_42 = arith.constant 0 : index
      %94 = vector.load %arg6[%c0_41, %c0_42] : memref<1x32xf32, #tpu.memory_space<vmem>>, vector<1x32xf32>
      %95 = vector.broadcast %94 : vector<1x32xf32> to vector<8x32xf32>
      %96 = arith.addf %93, %95 : vector<8x32xf32>
      %c0_43 = arith.constant 0 : index
      %c0_44 = arith.constant 0 : index
      %c0_45 = arith.constant 0 : index
      %97 = vector.load %arg7[%c0_43, %c0_44, %c0_45] : memref<1x8x32xf32, #tpu.memory_space<vmem>>, vector<1x8x32xf32>
      %98 = vector.shape_cast %97 : vector<1x8x32xf32> to vector<8x32xf32>
      %99 = vector.shape_cast %96 : vector<8x32xf32> to vector<1x8x32xf32>
      tpu.vector_store %arg7[%c0_43, %c0_44, %c0_45], %99 {strides = array<i32>} : memref<1x8x32xf32, #tpu.memory_space<vmem>>, vector<1x8x32xf32>,
    } else {
    }
    return
  }
  func.func @transform_0(%arg0: i32, %arg1: i32) -> (i32, i32, i32) {
    %c0_i32 = arith.constant 0 : i32
    %c0_i32_0 = arith.constant 0 : i32
    %c0_i32_1 = arith.constant 0 : i32
    return %arg0, %c0_i32, %c0_i32_0 : i32, i32, i32
  }
  func.func @transform_1(%arg0: i32, %arg1: i32) -> (i32, i32, i32) {
    %c0_i32 = arith.constant 0 : i32
    %c0_i32_0 = arith.constant 0 : i32
    %c0_i32_1 = arith.constant 0 : i32
    return %arg1, %c0_i32, %c0_i32_0 : i32, i32, i32
  }
  func.func @transform_2(%arg0: i32, %arg1: i32) -> (i32, i32, i32) {
    %c0_i32 = arith.constant 0 : i32
    %c0_i32_0 = arith.constant 0 : i32
    %c0_i32_1 = arith.constant 0 : i32
    return %arg1, %c0_i32, %c0_i32_0 : i32, i32, i32
  }
  func.func @transform_3(%arg0: i32, %arg1: i32) -> (i32, i32, i32) {
    %c0_i32 = arith.constant 0 : i32
    %c0_i32_0 = arith.constant 0 : i32
    %c0_i32_1 = arith.constant 0 : i32
    return %arg1, %c0_i32, %c0_i32_0 : i32, i32, i32
  }
  func.func @transform_4(%arg0: i32, %arg1: i32) -> (i32, i32) {
    %c0_i32 = arith.constant 0 : i32
    %c0_i32_0 = arith.constant 0 : i32
    %c0_i32_1 = arith.constant 0 : i32
    return %c0_i32, %c0_i32_0 : i32, i32
  }
  func.func @transform_5(%arg0: i32, %arg1: i32) -> (i32, i32, i32) {
    %c0_i32 = arith.constant 0 : i32
    %c0_i32_0 = arith.constant 0 : i32
    %c0_i32_1 = arith.constant 0 : i32
    return %arg0, %c0_i32, %c0_i32_0 : i32, i32, i32
  }
}

</mosaic_0001>

<bundles_post_ra>
// kernel: tpu_custom_call.1
= control target key start
LH: loop header
LB: loop body
LE: loop exit
PB: predicated region body
PF: predicated region fallthrough
CT: control target
= control target key end

     0   :  { %10 = vsyncpa [#allocation4], 0  ;;  %s2119_s0 = inlined_call_operand.hbm [shape: f32[2,8,32], index: 0, kind: input, shape index: {}]   ;;  %s2120_s1 = inlined_call_operand.hbm [shape: f32[1,32,96], index: 1, kind: input, shape index: {}]   ;;  %s2121_s2 = inlined_call_operand.vmem [shape: f32[1,1,96], index: 2, kind: input, shape index: {}]   ;;  %s2122_s3 = inlined_call_operand.hbm [shape: f32[1,32,32], index: 3, kind: input, shape index: {}]   ;;  %s2123_s4 = inlined_call_operand.vmem [shape: f32[1,32], index: 4, kind: input, shape index: {}]   ;;  %s2124_s5 = inlined_call_operand.hbm [shape: f32[2,8,32], index: 5, kind: output, shape index: {}]  }
   0x1   :  { %12 = vsyncpa [#allocation4 + $0x1], 0 }
   0x2   :  { %13 = vsyncpa [#allocation7], 0 }
   0x3   :  { %14 = vsyncpa [#allocation5], 0 }
   0x4   :  { %16 = vsyncpa [#allocation5 + $0x1], 0  ;;  %s1783_s18 = smov 0   ;;  %s1785_s19 = smov 0  }
   0x5   :  { %s1787_s20 = smov 0   ;;  %s1789_s21 = smov 0  }
   0x6   :  { %s1791_s22 = smov 0   ;;  %s1793_s23 = smov 0  }
   0x7 LB: > { %s1304_s24 = sadd.s32 4294967295, %s1728_s23   ;;  %s1305_s25 = sadd.s32 4294967294, %s1728_s23   ;;  %s1728_s23 = sphi %s1793_s23, %s22_s23   ;;  %s1724_s22 = sphi %s1791_s22, %s2146_s22   ;;  %s1720_s21 = sphi %s1789_s21, %s2145_s21   ;;  %s1716_s20 = sphi %s1787_s20, %s2144_s20   ;;  %s1712_s19 = sphi %s1785_s19, %s2143_s19   ;;  %s1708_s18 = sphi %s1783_s18, %s2142_s18  }
   0x8   : > { %p54_p0 = scmp.ne.s32.totalorder %s1712_s19, %s1708_s18  ;;  %p1817_p1 = scmp.eq.s32.totalorder %s1304_s24, 0 }
   0x9   : > { %p1821_p2 = scmp.eq.s32.totalorder %s1304_s24, 1  ;;  %p183_p3 = scmp.eq.s32.totalorder %s1305_s25, 1 }
   0xa   : > { %s2129_s26 = scalar_select %p1817_p1, 1, 0 }
   0xb   : > { %p1827_p4 = por %p1817_p1, %p54_p0  ;;  %p1306_p5 = scmp.ge.s32.totalorder %s1728_s23, 1 }
   0xc   : > { %p1832_p6 = por %p183_p3, %p54_p0  ;;  %p190_p7 = scmp.lt.s32.totalorder %s1728_s23, 3 }
   0xd   : > { %s2131_s28 = scalar_select %p1827_p4, 1, 0 }
   0xe   : > { %s2132_s29 = scalar_select %p1832_p6, 1, 0 }
   0xf   : > { %p1837_p8 = pnand %p1306_p5, %p190_p7  ;;  %s1730_s6 = smov [#allocation6]  }
  0x10   : > { %s205_s7 = sshll.u32 %s1730_s6, 4  ;;  %s1731_s9 = smov [#allocation8]   ;;  %s1841_s7 = int_to_ptr.vmem [resolvable:$true] %s205_s7 }
  0x11   : > { %p1450_p9 = pneg %p1837_p8  ;;  %s227_s10 = sshll.u32 %s1731_s9, 4  ;;  %s1852_s10 = int_to_ptr.vmem [resolvable:$true] %s227_s10 }
  0x12   : > { %s1556_s13 = scalar_lea.hbm %s2120_s1, 512 }
  0x13   : > { %p1848_p11 = pnand %p1450_p9, %p1817_p1  ;;  %p1557_p12 = scmp.ne.s32.totalorder %s2120_s1, %s1556_s13 }
  0x14   : > { %p1563_p5 = scmp.lt.u32.totalorder %s1556_s13, %s2120_s1 }
  0x15   : > { %p1558_p13 = pneg %p1848_p11 }
  0x17   : > { %p1559_p0 = pnand %p1558_p13, %p1557_p12 }
  0x19   : > { %p1560_p3 = pneg %p1559_p0 }
  0x1b   : > { %p1565_p7 = pnand %p1563_p5, %p1560_p3 }
  0x1d   : > { %1568 = shalt.err (!%p1565_p7)
}
  0x1e   : > { %s1569_s24 = scalar_lea.vmem %s1841_s7, 512  ;;  %p1577_p1 = scmp.lt.s32.totalorder %s1841_s7, %s1841_s7 }
  0x1f   : > { %p1570_p9 = scmp.ne.s32.totalorder %s1841_s7, %s1569_s24  ;;  %p1578_p12 = scmp.lt.s32.totalorder %s1569_s24, %s1569_s24 }
  0x21   : > { %p1572_p10 = pnand %p1570_p9, %p1558_p13  ;;  %p1579_p0 = por %p1578_p12, %p1577_p1 }
  0x23   : > { %p1573_p6 = pneg %p1572_p10 }
  0x25   : > { %p1580_p4 = pnand %p1579_p0, %p1573_p6 }
  0x27   : > { %1583 = shalt.err (!%p1580_p4)
}
  0x28   : > { %s1732_s25 = smov 128   ;;  %s1733_s6 = smov 8  }
  0x29   : > { %1453 = dma.hbm_to_vmem [thread:$0]  (!%p1848_p11), %s2120_s1, 512, %s1841_s7, [#allocation7], %s1732_s25, %s1732_s25, %s1733_s6  }
  0x2a   : > { %s1584_s14 = scalar_lea.hbm %s2122_s3, 512 }
  0x2b   : > { %p1585_p1 = scmp.ne.s32.totalorder %s2122_s3, %s1584_s14  ;;  %p1591_p10 = scmp.lt.u32.totalorder %s1584_s14, %s2122_s3 }
  0x2d   : > { %p1587_p4 = pnand %p1585_p1, %p1558_p13 }
  0x2f   : > { %p1588_p6 = pneg %p1587_p4 }
  0x31   : > { %p1593_p3 = pnand %p1591_p10, %p1588_p6 }
  0x33   : > { %1596 = shalt.err (!%p1593_p3)
}
  0x34   : > { %s1597_s7 = scalar_lea.vmem %s1852_s10, 512  ;;  %p1605_p12 = scmp.lt.s32.totalorder %s1852_s10, %s1852_s10 }
  0x35   : > { %p1598_p5 = scmp.ne.s32.totalorder %s1852_s10, %s1597_s7  ;;  %p1606_p0 = scmp.lt.s32.totalorder %s1597_s7, %s1597_s7 }
  0x37   : > { %p1600_p7 = pnand %p1598_p5, %p1558_p13  ;;  %p1607_p1 = por %p1606_p0, %p1605_p12 }
  0x39   : > { %p1601_p9 = pneg %p1600_p7 }
  0x3b   : > { %p1608_p4 = pnand %p1607_p1, %p1601_p9 }
  0x3d   : > { %1611 = shalt.err (!%p1608_p4)
}
  0x3e   : > { %1456 = dma.hbm_to_vmem [thread:$0]  (!%p1848_p11), %s2122_s3, 512, %s1852_s10, [#allocation7], %s1732_s25, %s1732_s25, %s1733_s6  }
  0x3f   : > { %s34_s12 = sadd.s32 1, %s1724_s22  ;;  %s41_s13 = sadd.s32 1, %s1716_s20 }
  0x40   : > { %p36_p13 = scmp.ge.s32.totalorder %s34_s12, 2  ;;  %p48_p6 = scmp.ne.s32.totalorder %s1716_s20, %s1712_s19 }
  0x41   : > { %p49_p10 = scmp.eq.s32.totalorder %s1728_s23, 0  ;;  %p1467_p3 = scmp.lt.s32.totalorder %s1728_s23, 2 }
  0x42   : > { %s2148_s12 = smov (%p36_p13, %s34_s12), 0  ;;  %p1916_p7 = por %p1821_p2, %p48_p6 }
  0x43   : > { %p50_p5 = por %p49_p10, %p48_p6  ;;  %s38_s14 = ssub.s32 %s1724_s22, %s2148_s12 }
  0x44   : > { %s2135_s8 = scalar_select %p1916_p7, 1, 0 }
  0x45   : > { %s244_s15 = sand.u32 1, %s1716_s20   ;;  %p39_p9 = scmp.eq.s32.totalorder %s38_s14, 0 }
  0x46   : > { %s1311_s10 = sshll.u32 %s244_s15, 3  ;;  %s1312_s25 = sshll.u32 %s1724_s22, 7 }
  0x47   : > { %s1925_s6 = scalar_select %p39_p9, %s1716_s20, %s41_s13  }
  0x48   : > { %s1930_s24 = scalar_lea.hbm %s2119_s0, %s1312_s25  ;;  %s248_s27 = scalar_lea.vmem [#allocation3], %s1311_s10 }
  0x49   : > { %s255_s7 = sshll.u32 %s248_s27, 4  ;;  %p1934_p2 = pnand %p1467_p3, %p50_p5  ;;  %s1938_s7 = int_to_ptr.vmem [resolvable:$true] %s255_s7 }
  0x4a   : > { %s245_s11 = scalar_lea.sflag [#allocation4], %s244_s15  ;;  %s1612_s13 = scalar_lea.hbm %s1930_s24, 128 }
  0x4b   : > { %p1613_p11 = scmp.ne.s32.totalorder %s1930_s24, %s1612_s13  ;;  %p1614_p12 = pneg %p1934_p2 }
  0x4c   : > { %s1617_s25 = scalar_lea.hbm %s2119_s0, 256  ;;  %p1618_p4 = scmp.lt.u32.totalorder %s1930_s24, %s2119_s0 }
  0x4d   : > { %p1615_p0 = pnand %p1614_p12, %p1613_p11  ;;  %p1619_p13 = scmp.lt.u32.totalorder %s1617_s25, %s1612_s13 }
  0x4e   : > { %p1621_p10 = scmp.lt.u32.totalorder %s1612_s13, %s1930_s24 }
  0x4f   : > { %p1616_p1 = pneg %p1615_p0  ;;  %p1620_p6 = por %p1619_p13, %p1618_p4 }
  0x51   : > { %p1622_p3 = por %p1621_p10, %p1620_p6 }
  0x53   : > { %p1623_p5 = pnand %p1622_p3, %p1616_p1 }
  0x55   : > { %1626 = shalt.err (!%p1623_p5)
}
  0x56   : > { %s1627_s15 = scalar_lea.vmem %s1938_s7, 128  ;;  %s1734_s27 = smov [#allocation3]  }
  0x57   : > { %p1628_p9 = scmp.ne.s32.totalorder %s1938_s7, %s1627_s15  ;;  %s1632_s14 = sshll.u32 %s1734_s27, 4  ;;  %s1633_s14 = int_to_ptr.vmem [resolvable:$false] %s1632_s14 }
  0x58   : > { %s1634_s10 = scalar_lea.vmem %s1633_s14, 256  ;;  %p1635_p7 = scmp.lt.s32.totalorder %s1938_s7, %s1633_s14 }
  0x59   : > { %p1630_p11 = pnand %p1628_p9, %p1614_p12  ;;  %p1636_p4 = scmp.lt.s32.totalorder %s1634_s10, %s1627_s15 }
  0x5b   : > { %p1631_p0 = pneg %p1630_p11  ;;  %p1637_p13 = por %p1636_p4, %p1635_p7 }
  0x5d   : > { %p1638_p6 = pnand %p1637_p13, %p1631_p0 }
  0x5f   : > { %1641 = shalt.err (!%p1638_p6)
}
  0x60   : > { %1460 = dma.hbm_to_vmem [thread:$0]  (!%p1934_p2), %s1930_s24, 128, %s1938_s7, %s245_s11  }
  0x61   : > { %264 = sbr.rel (%p1837_p8) target bundleno = 1775 (0x6ef), region = 40  ;;  %s1968_s13 = sand.u32 (!%p1837_p8), 1, %s1712_s19  }
  0x62   : > { %s1314_s25 = sshll.u32 (!%p1837_p8), %s1968_s13, 3  ;;  %s267_s16 = scalar_lea.sflag (!%p1837_p8), [#allocation4], %s1968_s13 }
  0x63   : > { %s270_s17 = scalar_lea.vmem (!%p1837_p8), [#allocation3], %s1314_s25  ;;  %p2137_p7 = scmp.ne.s32.totalorder (!%p1837_p8), %s2131_s28, 0 }
  0x68   : > { %1695 = dma.done.wait (%p2137_p7), %s267_s16, 128  }
  0x69   : > { %1697 = vsyncadd (%p2137_p7), %s267_s16, 4294967168  ;;  %p2138_p2 = scmp.ne.s32.totalorder %s2129_s26, 0 }
  0x6b   : > { %1699 = dma.done.wait (%p2138_p2), [#allocation7], 1024  }
  0x6c   : > { %1701 = vsyncadd (%p2138_p2), [#allocation7], 4294966272  ;;  %vm315_vm0 = vcmask 261120   ;;  %v1735_v0 = vmov 0.0|0.0   ;;  %vm1736_vm1 = vmmov 0   ;;  %v1737_v1 = vmov 0.0  }
  0x6d   : > { %1426 = vmatprep.subr.bf16.mxu0 %v1735_v0  ;;  %1372 = vmatprep.mubr.msk.f32.mxu0 %vm1736_vm1, %v1737_v1  ;;  %316 = vst.msk [vmem:[#allocation2] sm:$0xff] %vm315_vm0, %v1737_v1  ;;  %v318_v2 = vld [vmem:[#allocation6] sm:$0xff]  ;;  %v319_v3 = vld [vmem:[#allocation6 + $0x8] sm:$0xff]  ;;  %v320_v4 = vld [vmem:[#allocation6 + $0x10] sm:$0xff]  ;;  %s1738_s30 = smov 64   ;;  %s1739_s24 = smov 96  }
  0x6e   : > { %1375 = vmatprep.subr.mxu1 %v1737_v1  ;;  %1377 = vmatprep.mubr.msk.f32.mxu1 %vm1736_vm1, %v1737_v1  ;;  %v1427_v5 = vpack.c.bf16 %v319_v3, %v318_v2  ;;  %v321_v6 = vld [vmem:[#allocation6 + $0x18] sm:$0xff]  ;;  %v1318_v9 = vld [vmem:[%s2121_s2] ss:$0 sm:$0xff]  ;;  %s1740_s7 = smov 88   ;;  %s1741_s9 = smov 120   ;;  %vm406_vm2 = vcmask 64512  }
  0x6f   : > { %v1430_v7 = vpack.c.bf16 %v321_v6, %v320_v4  ;;  %v317_v8 = vld [vmem:[%s270_s17] sm:$0xff]  ;;  %s1742_s11 = smov 80   ;;  %s1743_s15 = smov 112   ;;  %v1085_v63 = vld [vmem:[#allocation8] sm:$0xff]  ;;  %v1086_v2 = vld [vmem:[#allocation8 + $0x8] sm:$0xff]  ;;  %vm1080_vm3 = vcmask 130048  }
  0x70   : > { %1428 = vmatpush3.bf16.msra.mxu0 %v1427_v5  ;;  %s1744_s27 = smov 72   ;;  %s1745_s14 = smov 104   ;;  %v1433_v4 = vpack.c.bf16 %v1086_v2, %v1085_v63  ;;  %v1087_v5 = vld [vmem:[#allocation8 + $0x10] sm:$0xff]  ;;  %v1088_v6 = vld [vmem:[#allocation8 + $0x18] sm:$0xff]  ;;  %vm1082_vm4 = vcmask 195584  }
  0x71   : > { %1429 = vmatprep.subr.bf16.mxu0 %v1735_v0  ;;  %s1746_s10 = smov 56   ;;  %s1747_s16 = smov 40  }
  0x72   : > { %s1748_s17 = smov 48   ;;  %s1749_s26 = smov 8  }
  0x73   : > { %s1750_s28 = smov 16   ;;  %p2139_p12 = scmp.ne.s32.totalorder %s2135_s8, 0 }
  0x74   : > { %1431 = vmatpush3.bf16.msra.mxu0 %v1430_v7 }
  0x75   : > { %1395 = vmatprep.subr.mxu0 %v1737_v1 }
  0x77   : > { %1373 = vmatmul.mubr.msk.f32.vlgmr.msra.gmra.mrb[0].mxu0 %vm315_vm0, %v317_v8  ;;  %v1436_v8 = vpack.c.bf16 %v1088_v6, %v1087_v5 }
  0x78   : > { %1397 = vmatprep.mubr.msk.f32.mxu0 %vm1736_vm1, %v1737_v1 }
 0x14a   : > { %v399_v10 = vpop.f32.mrb[0].mxu0 }
 0x14b   : > { %v1998_v11 = vadd.f32 %v1318_v9, %v399_v10  ;;  %v1374_v12 = vpop.f32.mrb[1].mxu0 }
 0x14d   : > { %491 = vrot.lane.b32.xlu1 %v1998_v11, %s1738_s30  ;;  %404 = vrot.lane.b32.xlu0 %v1998_v11, %s1739_s24  ;;  %s1751_s30 = smov 24  }
 0x151   : > { %571 = vrot.lane.b32.xlu1 %v1998_v11, %s1740_s7 }
 0x155   : > { %569 = vrot.lane.b32.xlu1 %v1998_v11, %s1741_s9  ;;  %s1335_s9 = sshll.u32 %s1720_s21, 7  ;;  %s1752_s21 = smov [#allocation9]  }
 0x159   : > { %737 = vrot.lane.b32.xlu1 %v1998_v11, %s1742_s11  ;;  %s307_s11 = scalar_lea.vmem [#allocation9], %s1314_s25  ;;  %s1646_s25 = sshll.u32 %s1752_s21, 4  ;;  %s1647_s25 = int_to_ptr.vmem [resolvable:$false] %s1646_s25 }
 0x15d   : > { %735 = vrot.lane.b32.xlu1 %v1998_v11, %s1743_s15  ;;  %s1191_s15 = sshll.u32 %s307_s11, 4  ;;  %s2071_s15 = int_to_ptr.vmem [resolvable:$true] %s1191_s15 }
 0x15e   : > { %p1649_p3 = scmp.lt.s32.totalorder %s2071_s15, %s1647_s25 }
 0x161   : > { %903 = vrot.lane.b32.xlu1 %v1998_v11, %s1744_s27 }
 0x165   : > { %901 = vrot.lane.b32.xlu1 %v1998_v11, %s1745_s14 }
 0x1bf   : > { %v492_v13 = vpop.permute.xlu1 %491  ;;  %v405_v14 = vpop.permute.xlu0 %404 }
 0x1c0   : > { %1376 = vmatpush3.xpose.msk.msra.mxu1 %vm406_vm2, %v405_v14 }
 0x1c1   : > { %1380 = vmatprep.subr.mxu1 %v1737_v1 }
 0x1c3   : > { %v572_v15 = vpop.permute.xlu1 %571  ;;  %1378 = vmatmul.mubr.msk.f32.vlgmr.msra.gmra.mrb[0].mxu1 %vm406_vm2, %v1998_v11 }
 0x1c4   : > { %1381 = vmatpush3.msra.mxu1 %v492_v13  ;;  %1382 = vmatprep.mubr.msk.f32.mxu1 %vm1736_vm1, %v1737_v1 }
 0x1c5   : > { %1385 = vmatprep.subr.mxu1 %v1737_v1 }
 0x1c7   : > { %v570_v16 = vpop.permute.xlu1 %569 }
 0x1cb   : > { %v738_v17 = vpop.permute.xlu1 %737 }
 0x1cc   : > { %1396 = vmatpush3.xpose.msk.msra.mxu0 %vm406_vm2, %v738_v17 }
 0x1cd   : > { %1405 = vmatprep.subr.mxu0 %v1737_v1 }
 0x1cf   : > { %v736_v18 = vpop.permute.xlu1 %735 }
 0x1d0   : > { %1398 = vmatmul.mubr.msk.f32.vlgmr.msra.gmra.mrb[2].mxu0 %vm406_vm2, %v736_v18 }
 0x1d1   : > { %1407 = vmatprep.mubr.msk.f32.mxu0 %vm1736_vm1, %v1737_v1 }
 0x1d3   : > { %v904_v19 = vpop.permute.xlu1 %903 }
 0x1d4   : > { %1406 = vmatpush3.xpose.msk.msra.mxu0 %vm406_vm2, %v904_v19 }
 0x1d5   : > { %1432 = vmatprep.subr.bf16.mxu0 %v1735_v0 }
 0x1d7   : > { %v902_v20 = vpop.permute.xlu1 %901 }
 0x1d8   : > { %1408 = vmatmul.mubr.msk.f32.vlgmr.msra.gmra.mrb[4].mxu0 %vm406_vm2, %v902_v20 }
 0x1d9   : > { %1423 = vmatprep.mubr.msk.f32.mxu0 %vm1736_vm1, %v1737_v1  ;;  %1434 = vmatpush3.bf16.msra.mxu0 %v1433_v4 }
 0x1da   : > { %1435 = vmatprep.subr.bf16.mxu0 %v1735_v0 }
 0x1dd   : > { %1437 = vmatpush3.bf16.msra.mxu0 %v1436_v8 }
 0x296   : > { %v477_v21 = vpop.f32.mrb[0].mxu1 }
 0x297   : > { %v481_v22 = vmul.f32 0.35355338, %v477_v21  ;;  %v1379_v23 = vpop.f32.mrb[1].mxu1 }
 0x299   : > { %v482_v24 = vsel %vm406_vm2, %v481_v22, -inf }
 0x29a   : > { %483 = vmax.xlane.f32.xlu0 %v482_v24 }
 0x2a3   : > { %v809_v25 = vpop.f32.mrb[2].mxu0 }
 0x2a4   : > { %v1399_v26 = vpop.f32.mrb[3].mxu0  ;;  %v813_v29 = vmul.f32 0.35355338, %v809_v25 }
 0x2a6   : > { %v814_v31 = vsel %vm406_vm2, %v813_v29, -inf }
 0x2ab   : > { %v975_v27 = vpop.f32.mrb[4].mxu0 }
 0x2ac   : > { %v1409_v28 = vpop.f32.mrb[5].mxu0  ;;  %v979_v30 = vmul.f32 0.35355338, %v975_v27 }
 0x2ad   : > { %v1084_v28 = vld [vmem:[#allocation2] sm:$0xff] }
 0x2ae   : > { %v980_v32 = vsel %vm406_vm2, %v979_v30, -inf }
 0x2b0   : > { %657 = vrot.lane.b32.xlu0 %v1998_v11, %s1746_s10  ;;  %s2069_s10 = scalar_lea.hbm %s2124_s5, %s1335_s9 }
 0x2cf   : > { %815 = vmax.xlane.f32.xlu0 %v814_v31 }
 0x2d3   : > { %981 = vmax.xlane.f32.xlu0 %v980_v32  ;;  %v1333_v32 = vld [vmem:[%s2123_s4] ss:$0 sm:$0xff] }
 0x2e9   : > { %989 = vrot.lane.b32.xlu0 %v1998_v11, %s1747_s16  ;;  %s1178_s16 = scalar_lea.sflag [#allocation5], %s1968_s13 }
 0x327   : > { %v484_v33 = vpop.xlane.xlu0 %483 }
 0x328   : > { %v485_v34 = vsub.f32 %v481_v22, %v484_v33 }
 0x32a   : > { %v486_v35 = vmul.f32 1.442695, %v485_v34 }
 0x32b   : > { %v658_v37 = vpop.permute.xlu0 %657 }
 0x32c   : > { %1540 = vpow2.f32 %v486_v35 }
 0x336   : > { %v1541_v36 = vpop.eup %1540 }
 0x337   : > { %1383 = vmatmul.mubr.msk.f32.vlgmr.msra.gmra.mrb[2].mxu1 %vm406_vm2, %v1541_v36  ;;  %v488_v61 = vsel %vm406_vm2, %v1541_v36, 0.0 }
 0x338   : > { %1386 = vmatpush3.xpose.msk.msra.mxu1 %vm406_vm2, %v572_v15  ;;  %1387 = vmatprep.mubr.msk.f32.mxu1 %vm1736_vm1, %v1737_v1 }
 0x339   : > { %1390 = vmatprep.subr.mxu1 %v1737_v1 }
 0x33b   : > { %1388 = vmatmul.mubr.msk.f32.vlgmr.msra.gmra.mrb[4].mxu1 %vm406_vm2, %v570_v16 }
 0x33c   : > { %1391 = vmatpush3.msra.mxu1 %v658_v37  ;;  %1392 = vmatprep.mubr.msk.f32.mxu1 %vm1736_vm1, %v1737_v1 }
 0x33d   : > { %1400 = vmatprep.subr.mxu1 %v1737_v1 }
 0x35c   : > { %v816_v44 = vpop.xlane.xlu0 %815 }
 0x35d   : > { %v817_v45 = vsub.f32 %v813_v29, %v816_v44 }
 0x35f   : > { %v818_v46 = vmul.f32 1.442695, %v817_v45 }
 0x360   : > { %v982_v49 = vpop.xlane.xlu0 %981 }
 0x361   : > { %1542 = vpow2.f32 %v818_v46  ;;  %v983_v50 = vsub.f32 %v979_v30, %v982_v49 }
 0x363   : > { %v984_v53 = vmul.f32 1.442695, %v983_v50 }
 0x364   : > { %v990_v59 = vpop.permute.xlu0 %989 }
 0x36b   : > { %v1543_v47 = vpop.eup %1542 }
 0x36c   : > { %v820_v48 = vsel %vm406_vm2, %v1543_v47, 0.0 }
 0x40a   : > { %v2039_v38 = vpop.f32.mrb[2].mxu1 }
 0x40b   : > { %v1384_v39 = vpop.f32.mrb[3].mxu1 }
 0x40e   : > { %v643_v40 = vpop.f32.mrb[4].mxu1 }
 0x40f   : > { %v647_v41 = vmul.f32 0.35355338, %v643_v40  ;;  %v1389_v42 = vpop.f32.mrb[5].mxu1 }
 0x411   : > { %v648_v43 = vsel %vm406_vm2, %v647_v41, -inf }
 0x412   : > { %649 = vmax.xlane.f32.xlu1 %v648_v43 }
 0x423   : > { %823 = vrot.lane.b32.xlu1 %v1998_v11, %s1748_s17  ;;  %s1642_s17 = scalar_lea.vmem %s2071_s15, 128 }
 0x424   : > { %p1643_p8 = scmp.ne.s32.totalorder %s2071_s15, %s1642_s17 }
 0x426   : > { %p1644_p1 = pnand %p1643_p8, %p2139_p12 }
 0x428   : > { %p1645_p10 = pneg %p1644_p1 }
 0x447   : > { %821 = vadd.xlane.f32.xlu1 %v820_v48 }
 0x49f   : > { %v650_v51 = vpop.xlane.xlu1 %649 }
 0x4a0   : > { %v651_v52 = vsub.f32 %v647_v41, %v650_v51 }
 0x4a2   : > { %v652_v54 = vmul.f32 1.442695, %v651_v52 }
 0x4a3   : > { %v824_v56 = vpop.permute.xlu1 %823 }
 0x4a4   : > { %1544 = vpow2.f32 %v652_v54 }
 0x4a5   : > { %1546 = vpow2.f32 %v984_v53 }
 0x4ae   : > { %v1545_v55 = vpop.eup %1544 }
 0x4af   : > { %1393 = vmatmul.mubr.msk.f32.vlgmr.msra.gmra.mrb[6].mxu1 %vm406_vm2, %v1545_v55  ;;  %v654_v57 = vsel %vm406_vm2, %v1545_v55, 0.0  ;;  %v1547_v58 = vpop.eup %1546 }
 0x4b0   : > { %1401 = vmatpush3.msra.mxu1 %v824_v56  ;;  %655 = vadd.xlane.f32.xlu0 %v654_v57  ;;  %v986_v60 = vsel %vm406_vm2, %v1547_v58, 0.0 }
 0x4b1   : > { %1402 = vmatprep.mubr.msk.f32.mxu1 %vm1736_vm1, %v1737_v1  ;;  %1410 = vmatprep.subr.mxu1 %v1737_v1 }
 0x4b3   : > { %1403 = vmatmul.mubr.msk.f32.vlgmr.msra.gmra.mrb[8].mxu1 %vm406_vm2, %v1543_v47 }
 0x4b4   : > { %1411 = vmatpush3.msra.mxu1 %v990_v59  ;;  %987 = vadd.xlane.f32.xlu0 %v986_v60 }
 0x4b5   : > { %1412 = vmatprep.mubr.msk.f32.mxu1 %vm1736_vm1, %v1737_v1 }
 0x4b7   : > { %1413 = vmatmul.mubr.msk.f32.vlgmr.msra.gmra.mrb[10].mxu1 %vm406_vm2, %v1547_v58 }
 0x4b8   : > { %489 = vadd.xlane.f32.xlu0 %v488_v61 }
 0x4d4   : > { %v822_v3 = vpop.xlane.xlu1 %821 }
 0x53d   : > { %v656_v62 = vpop.xlane.xlu0 %655 }
 0x53e   : > { %1548 = vrcp.f32 %v656_v62 }
 0x53f   : > { %1550 = vrcp.f32 %v822_v3 }
 0x541   : > { %v988_v7 = vpop.xlane.xlu0 %987 }
 0x542   : > { %1552 = vrcp.f32 %v988_v7 }
 0x545   : > { %v490_v19 = vpop.xlane.xlu0 %489 }
 0x546   : > { %1554 = vrcp.f32 %v490_v19 }
 0x548   : > { %v1549_v1 = vpop.eup %1548 }
 0x549   : > { %v1551_v12 = vpop.eup %1550 }
 0x54c   : > { %v1553_v16 = vpop.eup %1552 }
 0x550   : > { %v1555_v20 = vpop.eup %1554 }
 0x551   : > { %v568_v22 = vmul.f32 %v1555_v20, %v2039_v38 }
 0x582   : > { %v729_v9 = vpop.f32.mrb[6].mxu1 }
 0x583   : > { %v734_v10 = vmul.f32 %v1549_v1, %v729_v9  ;;  %v1394_v11 = vpop.f32.mrb[7].mxu1 }
 0x585   : > { %1068 = vrot.lane.b32.xlu0 %v734_v10, %s1749_s26  ;;  %s1648_s26 = scalar_lea.vmem %s1647_s25, 256 }
 0x586   : > { %v895_v13 = vpop.f32.mrb[8].mxu1  ;;  %p1650_p5 = scmp.lt.s32.totalorder %s1648_s26, %s1642_s17 }
 0x587   : > { %v900_v14 = vmul.f32 %v1551_v12, %v895_v13  ;;  %v1404_v15 = vpop.f32.mrb[9].mxu1 }
 0x588   : > { %p1651_p9 = por %p1650_p5, %p1649_p3 }
 0x589   : > { %1072 = vrot.lane.b32.xlu1 %v900_v14, %s1750_s28 }
 0x58a   : > { %v1061_v0 = vpop.f32.mrb[10].mxu1  ;;  %p1652_p11 = pnand %p1651_p9, %p1645_p10 }
 0x58b   : > { %v1066_v17 = vmul.f32 %v1553_v16, %v1061_v0  ;;  %v1414_v18 = vpop.f32.mrb[11].mxu1 }
 0x58d   : > { %1076 = vrot.lane.b32.xlu0 %v1066_v17, %s1751_s30 }
 0x5f7   : > { %v1069_v21 = vpop.permute.xlu0 %1068 }
 0x5f8   : > { %v1079_v24 = vsel %vm406_vm2, %v568_v22, %v1069_v21 }
 0x5fb   : > { %v1073_v23 = vpop.permute.xlu1 %1072 }
 0x5fc   : > { %v1081_v25 = vsel %vm1080_vm3, %v1079_v24, %v1073_v23 }
 0x5ff   : > { %v1077_v26 = vpop.permute.xlu0 %1076 }
 0x600   : > { %v1083_v27 = vsel %vm1082_vm4, %v1081_v25, %v1077_v26 }
 0x601   : > { %1424 = vmatmul.mubr.msk.f32.vlgmr.msra.gmra.mrb[6].mxu0 %vm315_vm0, %v1083_v27 }
 0x6d4   : > { %v1158_v29 = vpop.f32.mrb[6].mxu0 }
 0x6d5   : > { %v1162_v30 = vadd.f32 %v1158_v29, %v1084_v28  ;;  %v1425_v31 = vpop.f32.mrb[7].mxu0 }
 0x6d7   : > { %1163 = vst.msk [vmem:[#allocation2] sm:$0xff] %vm315_vm0, %v1162_v30 }
 0x6de   : > { %v1167_v33 = vld [vmem:[#allocation2] sm:$0xff] }
 0x6df   : > { %v1175_v34 = vadd.f32 %v1333_v32, %v1167_v33 }
 0x6e1   : > { %1176 = vst.msk [vmem:[%s307_s11] sm:$0xff] %vm315_vm0, %v1175_v34 }
 0x6e2   : > { %1655 = shalt.err (!%p1652_p11)
}
 0x6e3   : > { %s1656_s13 = scalar_lea.hbm %s2069_s10, 128  ;;  %s1660_s24 = scalar_lea.hbm %s2124_s5, 256 }
 0x6e4   : > { %p1657_p0 = scmp.ne.s32.totalorder %s2069_s10, %s1656_s13  ;;  %p1661_p6 = scmp.lt.u32.totalorder %s2069_s10, %s2124_s5 }
 0x6e5   : > { %p1662_p7 = scmp.lt.u32.totalorder %s1660_s24, %s1656_s13  ;;  %p1664_p8 = scmp.lt.u32.totalorder %s1656_s13, %s2069_s10 }
 0x6e6   : > { %p1658_p4 = pnand %p1657_p0, %p2139_p12 }
 0x6e7   : > { %p1663_p2 = por %p1662_p7, %p1661_p6 }
 0x6e8   : > { %p1659_p13 = pneg %p1658_p4 }
 0x6e9   : > { %p1665_p1 = por %p1664_p8, %p1663_p2 }
 0x6eb   : > { %p1666_p10 = pnand %p1665_p1, %p1659_p13 }
 0x6ed   : > { %1669 = shalt.err (!%p1666_p10)
}
 0x6ee   : > { %1448 = dma.vmem_to_hbm [thread:$0]  (%p2139_p12), %s2071_s15, 128, %s2069_s10, %s1178_s16  }
 0x6ef PF: > { %s1203_s11 = sand.u32 1, %s1708_s18   ;;  %p2140_p3 = scmp.ne.s32.totalorder %s2132_s29, 0 }
 0x6f0   : > { %p2141_p5 = scmp.ge.s32.totalorder %s1728_s23, 2  ;;  %s1204_s27 = scalar_lea.sflag [#allocation5], %s1203_s11 }
 0x6f2   : > { %p1462_p9 = pnand %p2141_p5, %p2140_p3 }
 0x6f4   : > { %1703 = dma.done.wait (!%p1462_p9), %s1204_s27, 128  }
 0x6f5   : > { %1705 = vsyncadd (!%p1462_p9), %s1204_s27, 4294967168  ;;  %s22_s23 = sadd.s32 1, %s1728_s23   ;;  %s2142_s18 = smov %s1712_s19 }
 0x6f6   : > { %p19_p11 = scmp.ge.s32.totalorder %s22_s23, 4   ;;  %s2143_s19 = smov %s1716_s20 }
 0x6f7   : > { %s2144_s20 = smov %s1925_s6  ;;  %s2145_s21 = smov %s1724_s22 }
 0x6f8   : > { %s2146_s22 = smov %s2148_s12  ;;  %21 = sbr.rel (!%p19_p11) target bundleno = 7 (0x7), region = 106 }
 0x6ff   :  { %1209 = vsyncpa [#allocation4], 1 }
 0x700   :  { %1211 = vsyncpa [#allocation4 + $0x1], 1 }
 0x701   :  { %1212 = vsyncpa [#allocation7], 1 }
 0x702   :  { %1213 = vsyncpa [#allocation5], 1 }
 0x703   :  { %1215 = vsyncpa [#allocation5 + $0x1], 1 }

</bundles_post_ra>
